<compile_context>
chip_gen: v7x
topology: tpu7x:2x2x1
jax: 0.10.0
libtpu: 0.0.40
codegen_flags: <defaults>
</compile_context>

<pallas_src>
import jax
import jax.numpy as jnp
from jax import lax
from jax.experimental import pallas as pl
from jax.experimental.pallas import tpu as pltpu

NC = 3            # input channels
NDF = 4
N_CLASSES = 6
LRELU_SLOPE = 0.2
BN_EPS = 1e-5

CONV_BLOCK_M = 2048          # pixel-axis tile for conv matmuls
HEAD_BLOCK_K = 2048          # reduction tile for lin1 (98304 % 2048 == 0 at real size)
VMEM_LIMIT = 32 * 1024 * 1024


def _round_up(x, m):
    return ((x + m - 1) // m) * m


def _leaky_relu(x, slope=LRELU_SLOPE):
    return jnp.where(x >= 0, x, slope * x)


# ----------------------------------------------------------------------------
# Pallas kernel 1: conv-as-matmul (transposed layout) + folded BN + LeakyReLU
#   out[C_out, M] = leaky_relu((W @ cols_T) * scale + shift)
# ----------------------------------------------------------------------------
def _conv_mm_kernel(w_ref, x_ref, scale_ref, shift_ref, o_ref):
    acc = jnp.dot(w_ref[...], x_ref[...], preferred_element_type=jnp.float32)
    y = acc * scale_ref[...] + shift_ref[...]
    o_ref[...] = _leaky_relu(y).astype(o_ref.dtype)


def conv_matmul(w_matT, colsT, scale, shift, *, block_m=CONV_BLOCK_M):
    c_out, k = w_matT.shape
    k2, m = colsT.shape
    assert k == k2
    bm = min(block_m, _round_up(m, 128))          # lane-dense output tile
    mp = _round_up(m, bm)
    if mp != m:
        colsT = jnp.pad(colsT, ((0, 0), (0, mp - m)))

    cost = pl.CostEstimate(
        flops=2 * c_out * k * mp,
        transcendentals=0,
        bytes_accessed=(k * mp + c_out * k + c_out * mp) * 2 + 2 * c_out * 4,
    )
    out = pl.pallas_call(
        _conv_mm_kernel,
        out_shape=jax.ShapeDtypeStruct((c_out, mp), jnp.bfloat16),
        grid_spec=pltpu.PrefetchScalarGridSpec(
            num_scalar_prefetch=0,
            grid=(mp // bm,),
            in_specs=[
                pl.BlockSpec((c_out, k), lambda i: (0, 0)),     # weight (resident)
                pl.BlockSpec((k, bm), lambda i: (0, i)),        # patch columns
                pl.BlockSpec((c_out, 1), lambda i: (0, 0)),     # folded BN scale
                pl.BlockSpec((c_out, 1), lambda i: (0, 0)),     # folded BN shift
            ],
            out_specs=pl.BlockSpec((c_out, bm), lambda i: (0, i)),
        ),
        compiler_params=pltpu.CompilerParams(
            dimension_semantics=("parallel",),
            vmem_limit_bytes=VMEM_LIMIT,
        ),
        cost_estimate=cost,
    )(w_matT, colsT, scale, shift)
    return out[:, :m]


# ----------------------------------------------------------------------------
# Pallas kernel 2: fused head  y = (lrelu(x @ W1 + b1)) @ W2p + b2p
#   K-tiled lin1 with f32 VMEM accumulator; lin2 fused into the epilogue.
# ----------------------------------------------------------------------------
def _head_kernel(x_ref, w1_ref, b1_ref, w2_ref, b2_ref, o_ref, acc_ref):
    kk = pl.program_id(0)

    @pl.when(kk == 0)
    def _():
        acc_ref[...] = jnp.zeros_like(acc_ref)

    acc_ref[...] += jnp.dot(x_ref[...], w1_ref[...],
                            preferred_element_type=jnp.float32)

    @pl.when(kk == pl.num_programs(0) - 1)
    def _():
        h = _leaky_relu(acc_ref[...] + b1_ref[...])
        y = jnp.dot(h.astype(w2_ref.dtype), w2_ref[...],
                    preferred_element_type=jnp.float32) + b2_ref[...]
        o_ref[...] = y.astype(o_ref.dtype)


def head_matmul(flat, w1, b1, w2p, b2p, *, block_k=HEAD_BLOCK_K):
    b, kf = flat.shape
    n1 = w1.shape[1]
    n2p = w2p.shape[1]
    bp = _round_up(max(b, 1), 8)
    if bp != b:
        flat = jnp.pad(flat, ((0, bp - b), (0, 0)))
    if kf <= block_k:
        bk, kp = kf, kf
    else:
        bk = block_k
        kp = _round_up(kf, bk)
        if kp != kf:     # never hit at the toy or real (98304) feature counts
            flat = jnp.pad(flat, ((0, 0), (0, kp - kf)))
            w1 = jnp.pad(w1, ((0, kp - kf), (0, 0)))

    cost = pl.CostEstimate(
        flops=2 * bp * kp * n1 + 2 * bp * n1 * n2p,
        transcendentals=0,
        bytes_accessed=(bp * kp + kp * n1 + n1 * n2p) * 2
        + (n1 + n2p + bp * n2p) * 4,
    )
    out = pl.pallas_call(
        _head_kernel,
        out_shape=jax.ShapeDtypeStruct((bp, n2p), jnp.float32),
        grid_spec=pltpu.PrefetchScalarGridSpec(
            num_scalar_prefetch=0,
            grid=(kp // bk,),
            in_specs=[
                pl.BlockSpec((bp, bk), lambda k: (0, k)),     # activations
                pl.BlockSpec((bk, n1), lambda k: (k, 0)),     # lin1 weight (streamed)
                pl.BlockSpec((1, n1), lambda k: (0, 0)),      # lin1 bias
                pl.BlockSpec((n1, n2p), lambda k: (0, 0)),    # lin2 weight (padded)
                pl.BlockSpec((1, n2p), lambda k: (0, 0)),     # lin2 bias (padded)
            ],
            out_specs=pl.BlockSpec((bp, n2p), lambda k: (0, 0)),
            scratch_shapes=[pltpu.VMEM((bp, n1), jnp.float32)],
        ),
        compiler_params=pltpu.CompilerParams(
            dimension_semantics=("arbitrary",),               # K is a reduction
            vmem_limit_bytes=VMEM_LIMIT,
        ),
        cost_estimate=cost,
    )(flat, w1, b1, w2p, b2p)
    return out[:b, :]


# ----------------------------------------------------------------------------
# Glue: transposed im2col for Conv2d(kernel=4, stride=2, padding=1), CNHW layout
# ----------------------------------------------------------------------------
def im2col_T(x_cnhw, kernel=4, stride=2, pad=1):
    """(C, N, H, W) -> cols_T (k*k*C, N*Ho*Wo); K order = (tap, c)."""
    c, n, h, w = x_cnhw.shape
    xp = jnp.pad(x_cnhw, ((0, 0), (0, 0), (pad, pad), (pad, pad)))
    ho = (h + 2 * pad - kernel) // stride + 1
    wo = (w + 2 * pad - kernel) // stride + 1
    taps = []
    for kh in range(kernel):
        for kw in range(kernel):
            taps.append(xp[:, :, kh:kh + stride * ho:stride,
                           kw:kw + stride * wo:stride])
    colsT = jnp.stack(taps, axis=0)                    # (k*k, C, N, Ho, Wo)
    return colsT.reshape(kernel * kernel * c, n * ho * wo), (n, ho, wo)


def _fold_bn(conv_b, gamma, beta, mean, var, eps=BN_EPS):
    s = gamma / jnp.sqrt(var + eps)
    return s, (conv_b - mean) * s + beta


def prepare_params(params):
    """One-time: fold BN, reorder conv weights, pad lin2 to 128 lanes, cast to bf16."""
    prep = {}
    for name in ("conv1", "conv2", "conv3"):
        p = params[name]
        c_out, c_in, kh, kw = p["w"].shape
        w_matT = jnp.transpose(p["w"], (0, 2, 3, 1)).reshape(c_out, kh * kw * c_in)
        scale, shift = _fold_bn(p["b"], p["gamma"], p["beta"], p["mean"], p["var"])
        prep[name] = {
            "w_matT": w_matT.astype(jnp.bfloat16),
            "scale": scale.reshape(c_out, 1).astype(jnp.float32),
            "shift": shift.reshape(c_out, 1).astype(jnp.float32),
        }
    w2 = params["lin2"]["w"]
    b2 = params["lin2"]["b"]
    n2p = _round_up(w2.shape[1], 128)
    prep["head"] = {
        "w1": params["lin1"]["w"].astype(jnp.bfloat16),
        "b1": params["lin1"]["b"].reshape(1, -1).astype(jnp.float32),
        "w2p": jnp.pad(w2, ((0, 0), (0, n2p - w2.shape[1]))).astype(jnp.bfloat16),
        "b2p": jnp.pad(b2, (0, n2p - b2.shape[0])).reshape(1, -1).astype(jnp.float32),
    }
    return prep


# ----------------------------------------------------------------------------
# Forward
# ----------------------------------------------------------------------------
def conv_block(x_cnhw, layer):
    colsT, (n, ho, wo) = im2col_T(x_cnhw)
    y = conv_matmul(layer["w_matT"], colsT, layer["scale"], layer["shift"])
    return y.reshape(-1, n, ho, wo)                    # (C_out, N, Ho, Wo)


def cnn_classifier_forward(prep, x_nchw):
    # Channel-outermost layout keeps every conv output lane-dense (pixel axis
    # last and a 128-multiple) and makes the torch NCHW Flatten order cheap.
    x = jnp.transpose(x_nchw, (1, 0, 2, 3)).astype(jnp.bfloat16)   # (C, N, H, W)
    x = conv_block(x, prep["conv1"])     # Dropout(0.4): identity in eval mode
    x = conv_block(x, prep["conv2"])     # Dropout(0.4): identity in eval mode
    x = conv_block(x, prep["conv3"])     # Dropout(0.2): identity in eval mode
    c, n, ho, wo = x.shape
    flat = jnp.transpose(x, (1, 0, 2, 3)).reshape(n, c * ho * wo)  # torch Flatten
    h = prep["head"]
    y = head_matmul(flat, h["w1"], h["b1"], h["w2p"], h["b2p"])
    return y[:, :N_CLASSES]


# ----------------------------------------------------------------------------
# Parameters + pure-JAX float32 reference
# ----------------------------------------------------------------------------
def init_params(key, h, w):
    flat_dim = NDF * 8 * (h // 8) * (w // 8)   # 98304 at the original 384x512 input
    dims = [("conv1", NC, NDF * 2), ("conv2", NDF * 2, NDF * 4),
            ("conv3", NDF * 4, NDF * 8)]
    keys = iter(jax.random.split(key, 3 * 6 + 4))
    params = {}
    for name, cin, cout in dims:
        params[name] = {
            "w": 0.05 * jax.random.normal(next(keys), (cout, cin, 4, 4), jnp.float32),
            "b": 0.05 * jax.random.normal(next(keys), (cout,), jnp.float32),
            "gamma": 1.0 + 0.1 * jax.random.normal(next(keys), (cout,), jnp.float32),
            "beta": 0.1 * jax.random.normal(next(keys), (cout,), jnp.float32),
            "mean": 0.1 * jax.random.normal(next(keys), (cout,), jnp.float32),
            "var": jnp.abs(1.0 + 0.1 * jax.random.normal(next(keys), (cout,), jnp.float32)),
        }
    params["lin1"] = {
        "w": 0.02 * jax.random.normal(next(keys), (flat_dim, 256), jnp.float32),
        "b": 0.02 * jax.random.normal(next(keys), (256,), jnp.float32),
    }
    params["lin2"] = {
        "w": 0.02 * jax.random.normal(next(keys), (256, N_CLASSES), jnp.float32),
        "b": 0.02 * jax.random.normal(next(keys), (N_CLASSES,), jnp.float32),
    }
    return params


def reference_forward(params, x_nchw):
    x = x_nchw
    for name in ("conv1", "conv2", "conv3"):
        p = params[name]
        x = lax.conv_general_dilated(
            x, p["w"], window_strides=(2, 2), padding=((1, 1), (1, 1)),
            dimension_numbers=("NCHW", "OIHW", "NCHW"))
        x = x + p["b"][None, :, None, None]
        s = p["gamma"] / jnp.sqrt(p["var"] + BN_EPS)
        x = (x - p["mean"][None, :, None, None]) * s[None, :, None, None] \
            + p["beta"][None, :, None, None]
        x = _leaky_relu(x)
    n = x.shape[0]
    flat = x.reshape(n, -1)
    y = _leaky_relu(flat @ params["lin1"]["w"] + params["lin1"]["b"])
    return y @ params["lin2"]["w"] + params["lin2"]["b"]


if __name__ == "__main__":
    key = jax.random.PRNGKey(0)
    k_x, k_p = jax.random.split(key)

    B, H, W = 2, 32, 32                    # small test (original module implies 384x512)
    x = jax.random.normal(k_x, (B, NC, H, W), jnp.float32)   # NCHW input
    params = init_params(k_p, H, W)
    prep = prepare_params(params)          # one-time BN fold + bf16 cast

    fwd = jax.jit(cnn_classifier_forward)
    out = jax.block_until_ready(fwd(prep, x))

    ref = reference_forward(params, x)
    assert out.shape == (B, N_CLASSES), out.shape
    err = float(jnp.max(jnp.abs(out - ref)))
    # bf16 weight/activation streaming vs. float32 reference -> modest tolerance.
    assert err < 1e-2, f"max abs err {err} vs reference"

    print("KERNEL_OK")
</pallas_src>

<mosaic_0001>
module attributes {stable_mosaic.version = 11 : i64} {
  func.func @_conv_mm_kernel(%arg0: i32, %arg1: memref<8x48xbf16, #tpu.memory_space<vmem>>, %arg2: memref<48x512xbf16, #tpu.memory_space<vmem>>, %arg3: memref<8x1xf32, #tpu.memory_space<vmem>>, %arg4: memref<8x1xf32, #tpu.memory_space<vmem>>, %arg5: memref<8x512xbf16, #tpu.memory_space<vmem>>) attributes {dimension_semantics = [#tpu.dimension_semantics<parallel>], iteration_bounds = array<i64: 1>, scalar_prefetch = 0 : i64, scratch_operands = 0 : i64, tpu.core_type = #tpu.core_type<tc>, window_params = [{pipeline_mode = #tpu.pipeline_mode<synchronous>, transform_indices = @transform_0, window_bounds = array<i64: 8, 48>}, {transform_indices = @transform_1, window_bounds = array<i64: 48, 512>}, {pipeline_mode = #tpu.pipeline_mode<synchronous>, transform_indices = @transform_2, window_bounds = array<i64: 8, 1>}, {pipeline_mode = #tpu.pipeline_mode<synchronous>, transform_indices = @transform_3, window_bounds = array<i64: 8, 1>}, {transform_indices = @transform_4, window_bounds = array<i64: 8, 512>}]} {
    %c0 = arith.constant 0 : index
    %c0_0 = arith.constant 0 : index
    %0 = vector.load %arg1[%c0, %c0_0] : memref<8x48xbf16, #tpu.memory_space<vmem>>, vector<8x48xbf16>
    %c0_1 = arith.constant 0 : index
    %c0_2 = arith.constant 0 : index
    %1 = vector.load %arg2[%c0_1, %c0_2] : memref<48x512xbf16, #tpu.memory_space<vmem>>, vector<48x512xbf16>
    %cst = arith.constant dense<0.000000e+00> : vector<8x512xf32>
    %2 = tpu.matmul %0, %1, %cst {dimension_numbers = #tpu.dot_dimension_numbers<[1], [0], [0], [1], [0, 0, 1, 1], [], []>} : vector<8x48xbf16>, vector<48x512xbf16>, vector<8x512xf32> -> vector<8x512xf32>
    %c0_3 = arith.constant 0 : index
    %c0_4 = arith.constant 0 : index
    %3 = vector.load %arg3[%c0_3, %c0_4] : memref<8x1xf32, #tpu.memory_space<vmem>>, vector<8x1xf32>
    %4 = vector.broadcast %3 : vector<8x1xf32> to vector<8x512xf32>
    %5 = arith.mulf %2, %4 : vector<8x512xf32>
    %c0_5 = arith.constant 0 : index
    %c0_6 = arith.constant 0 : index
    %6 = vector.load %arg4[%c0_5, %c0_6] : memref<8x1xf32, #tpu.memory_space<vmem>>, vector<8x1xf32>
    %7 = vector.broadcast %6 : vector<8x1xf32> to vector<8x512xf32>
    %8 = arith.addf %5, %7 : vector<8x512xf32>
    %cst_7 = arith.constant 0.000000e+00 : f32
    %9 = vector.broadcast %cst_7 : f32 to vector<8x512xf32>
    %10 = arith.cmpf oge, %8, %9 : vector<8x512xf32>
    %cst_8 = arith.constant 2.000000e-01 : f32
    %11 = vector.broadcast %cst_8 : f32 to vector<8x512xf32>
    %12 = arith.mulf %11, %8 : vector<8x512xf32>
    %13 = arith.select %10, %8, %12 : vector<8x512xi1>, vector<8x512xf32>
    %14 = arith.truncf %13 : vector<8x512xf32> to vector<8x512xbf16>
    %c0_9 = arith.constant 0 : index
    %c0_10 = arith.constant 0 : index
    %15 = vector.load %arg5[%c0_9, %c0_10] : memref<8x512xbf16, #tpu.memory_space<vmem>>, vector<8x512xbf16>
    tpu.vector_store %arg5[%c0_9, %c0_10], %14 {strides = array<i32>} : memref<8x512xbf16, #tpu.memory_space<vmem>>, vector<8x512xbf16>,
    return
  }
  func.func @transform_0(%arg0: i32) -> (i32, i32) {
    %c0_i32 = arith.constant 0 : i32
    %c0_i32_0 = arith.constant 0 : i32
    %c0_i32_1 = arith.constant 0 : i32
    return %c0_i32, %c0_i32_0 : i32, i32
  }
  func.func @transform_1(%arg0: i32) -> (i32, i32) {
    %c0_i32 = arith.constant 0 : i32
    %c0_i32_0 = arith.constant 0 : i32
    return %c0_i32, %arg0 : i32, i32
  }
  func.func @transform_2(%arg0: i32) -> (i32, i32) {
    %c0_i32 = arith.constant 0 : i32
    %c0_i32_0 = arith.constant 0 : i32
    %c0_i32_1 = arith.constant 0 : i32
    return %c0_i32, %c0_i32_0 : i32, i32
  }
  func.func @transform_3(%arg0: i32) -> (i32, i32) {
    %c0_i32 = arith.constant 0 : i32
    %c0_i32_0 = arith.constant 0 : i32
    %c0_i32_1 = arith.constant 0 : i32
    return %c0_i32, %c0_i32_0 : i32, i32
  }
  func.func @transform_4(%arg0: i32) -> (i32, i32) {
    %c0_i32 = arith.constant 0 : i32
    %c0_i32_0 = arith.constant 0 : i32
    return %c0_i32, %arg0 : i32, i32
  }
}

module attributes {stable_mosaic.version = 11 : i64} {
  func.func @_conv_mm_kernel(%arg0: i32, %arg1: memref<16x128xbf16, #tpu.memory_space<vmem>>, %arg2: memref<128x128xbf16, #tpu.memory_space<vmem>>, %arg3: memref<16x1xf32, #tpu.memory_space<vmem>>, %arg4: memref<16x1xf32, #tpu.memory_space<vmem>>, %arg5: memref<16x128xbf16, #tpu.memory_space<vmem>>) attributes {dimension_semantics = [#tpu.dimension_semantics<parallel>], iteration_bounds = array<i64: 1>, scalar_prefetch = 0 : i64, scratch_operands = 0 : i64, tpu.core_type = #tpu.core_type<tc>, window_params = [{pipeline_mode = #tpu.pipeline_mode<synchronous>, transform_indices = @transform_0, window_bounds = array<i64: 16, 128>}, {transform_indices = @transform_1, window_bounds = array<i64: 128, 128>}, {pipeline_mode = #tpu.pipeline_mode<synchronous>, transform_indices = @transform_2, window_bounds = array<i64: 16, 1>}, {pipeline_mode = #tpu.pipeline_mode<synchronous>, transform_indices = @transform_3, window_bounds = array<i64: 16, 1>}, {transform_indices = @transform_4, window_bounds = array<i64: 16, 128>}]} {
    %c0 = arith.constant 0 : index
    %c0_0 = arith.constant 0 : index
    %0 = vector.load %arg1[%c0, %c0_0] : memref<16x128xbf16, #tpu.memory_space<vmem>>, vector<16x128xbf16>
    %c0_1 = arith.constant 0 : index
    %c0_2 = arith.constant 0 : index
    %1 = vector.load %arg2[%c0_1, %c0_2] : memref<128x128xbf16, #tpu.memory_space<vmem>>, vector<128x128xbf16>
    %cst = arith.constant dense<0.000000e+00> : vector<16x128xf32>
    %2 = tpu.matmul %0, %1, %cst {dimension_numbers = #tpu.dot_dimension_numbers<[1], [0], [0], [1], [0, 0, 1, 1], [], []>} : vector<16x128xbf16>, vector<128x128xbf16>, vector<16x128xf32> -> vector<16x128xf32>
    %c0_3 = arith.constant 0 : index
    %c0_4 = arith.constant 0 : index
    %3 = vector.load %arg3[%c0_3, %c0_4] : memref<16x1xf32, #tpu.memory_space<vmem>>, vector<16x1xf32>
    %4 = vector.broadcast %3 : vector<16x1xf32> to vector<16x128xf32>
    %5 = arith.mulf %2, %4 : vector<16x128xf32>
    %c0_5 = arith.constant 0 : index
    %c0_6 = arith.constant 0 : index
    %6 = vector.load %arg4[%c0_5, %c0_6] : memref<16x1xf32, #tpu.memory_space<vmem>>, vector<16x1xf32>
    %7 = vector.broadcast %6 : vector<16x1xf32> to vector<16x128xf32>
    %8 = arith.addf %5, %7 : vector<16x128xf32>
    %cst_7 = arith.constant 0.000000e+00 : f32
    %9 = vector.broadcast %cst_7 : f32 to vector<16x128xf32>
    %10 = arith.cmpf oge, %8, %9 : vector<16x128xf32>
    %cst_8 = arith.constant 2.000000e-01 : f32
    %11 = vector.broadcast %cst_8 : f32 to vector<16x128xf32>
    %12 = arith.mulf %11, %8 : vector<16x128xf32>
    %13 = arith.select %10, %8, %12 : vector<16x128xi1>, vector<16x128xf32>
    %14 = arith.truncf %13 : vector<16x128xf32> to vector<16x128xbf16>
    %c0_9 = arith.constant 0 : index
    %c0_10 = arith.constant 0 : index
    %15 = vector.load %arg5[%c0_9, %c0_10] : memref<16x128xbf16, #tpu.memory_space<vmem>>, vector<16x128xbf16>
    tpu.vector_store %arg5[%c0_9, %c0_10], %14 {strides = array<i32>} : memref<16x128xbf16, #tpu.memory_space<vmem>>, vector<16x128xbf16>,
    return
  }
  func.func @transform_0(%arg0: i32) -> (i32, i32) {
    %c0_i32 = arith.constant 0 : i32
    %c0_i32_0 = arith.constant 0 : i32
    %c0_i32_1 = arith.constant 0 : i32
    return %c0_i32, %c0_i32_0 : i32, i32
  }
  func.func @transform_1(%arg0: i32) -> (i32, i32) {
    %c0_i32 = arith.constant 0 : i32
    %c0_i32_0 = arith.constant 0 : i32
    return %c0_i32, %arg0 : i32, i32
  }
  func.func @transform_2(%arg0: i32) -> (i32, i32) {
    %c0_i32 = arith.constant 0 : i32
    %c0_i32_0 = arith.constant 0 : i32
    %c0_i32_1 = arith.constant 0 : i32
    return %c0_i32, %c0_i32_0 : i32, i32
  }
  func.func @transform_3(%arg0: i32) -> (i32, i32) {
    %c0_i32 = arith.constant 0 : i32
    %c0_i32_0 = arith.constant 0 : i32
    %c0_i32_1 = arith.constant 0 : i32
    return %c0_i32, %c0_i32_0 : i32, i32
  }
  func.func @transform_4(%arg0: i32) -> (i32, i32) {
    %c0_i32 = arith.constant 0 : i32
    %c0_i32_0 = arith.constant 0 : i32
    return %c0_i32, %arg0 : i32, i32
  }
}

module attributes {stable_mosaic.version = 11 : i64} {
  func.func @_conv_mm_kernel(%arg0: i32, %arg1: memref<32x256xbf16, #tpu.memory_space<vmem>>, %arg2: memref<256x128xbf16, #tpu.memory_space<vmem>>, %arg3: memref<32x1xf32, #tpu.memory_space<vmem>>, %arg4: memref<32x1xf32, #tpu.memory_space<vmem>>, %arg5: memref<32x128xbf16, #tpu.memory_space<vmem>>) attributes {dimension_semantics = [#tpu.dimension_semantics<parallel>], iteration_bounds = array<i64: 1>, scalar_prefetch = 0 : i64, scratch_operands = 0 : i64, tpu.core_type = #tpu.core_type<tc>, window_params = [{pipeline_mode = #tpu.pipeline_mode<synchronous>, transform_indices = @transform_0, window_bounds = array<i64: 32, 256>}, {transform_indices = @transform_1, window_bounds = array<i64: 256, 128>}, {pipeline_mode = #tpu.pipeline_mode<synchronous>, transform_indices = @transform_2, window_bounds = array<i64: 32, 1>}, {pipeline_mode = #tpu.pipeline_mode<synchronous>, transform_indices = @transform_3, window_bounds = array<i64: 32, 1>}, {transform_indices = @transform_4, window_bounds = array<i64: 32, 128>}]} {
    %c0 = arith.constant 0 : index
    %c0_0 = arith.constant 0 : index
    %0 = vector.load %arg1[%c0, %c0_0] : memref<32x256xbf16, #tpu.memory_space<vmem>>, vector<32x256xbf16>
    %c0_1 = arith.constant 0 : index
    %c0_2 = arith.constant 0 : index
    %1 = vector.load %arg2[%c0_1, %c0_2] : memref<256x128xbf16, #tpu.memory_space<vmem>>, vector<256x128xbf16>
    %cst = arith.constant dense<0.000000e+00> : vector<32x128xf32>
    %2 = tpu.matmul %0, %1, %cst {dimension_numbers = #tpu.dot_dimension_numbers<[1], [0], [0], [1], [0, 0, 1, 1], [], []>} : vector<32x256xbf16>, vector<256x128xbf16>, vector<32x128xf32> -> vector<32x128xf32>
    %c0_3 = arith.constant 0 : index
    %c0_4 = arith.constant 0 : index
    %3 = vector.load %arg3[%c0_3, %c0_4] : memref<32x1xf32, #tpu.memory_space<vmem>>, vector<32x1xf32>
    %4 = vector.broadcast %3 : vector<32x1xf32> to vector<32x128xf32>
    %5 = arith.mulf %2, %4 : vector<32x128xf32>
    %c0_5 = arith.constant 0 : index
    %c0_6 = arith.constant 0 : index
    %6 = vector.load %arg4[%c0_5, %c0_6] : memref<32x1xf32, #tpu.memory_space<vmem>>, vector<32x1xf32>
    %7 = vector.broadcast %6 : vector<32x1xf32> to vector<32x128xf32>
    %8 = arith.addf %5, %7 : vector<32x128xf32>
    %cst_7 = arith.constant 0.000000e+00 : f32
    %9 = vector.broadcast %cst_7 : f32 to vector<32x128xf32>
    %10 = arith.cmpf oge, %8, %9 : vector<32x128xf32>
    %cst_8 = arith.constant 2.000000e-01 : f32
    %11 = vector.broadcast %cst_8 : f32 to vector<32x128xf32>
    %12 = arith.mulf %11, %8 : vector<32x128xf32>
    %13 = arith.select %10, %8, %12 : vector<32x128xi1>, vector<32x128xf32>
    %14 = arith.truncf %13 : vector<32x128xf32> to vector<32x128xbf16>
    %c0_9 = arith.constant 0 : index
    %c0_10 = arith.constant 0 : index
    %15 = vector.load %arg5[%c0_9, %c0_10] : memref<32x128xbf16, #tpu.memory_space<vmem>>, vector<32x128xbf16>
    tpu.vector_store %arg5[%c0_9, %c0_10], %14 {strides = array<i32>} : memref<32x128xbf16, #tpu.memory_space<vmem>>, vector<32x128xbf16>,
    return
  }
  func.func @transform_0(%arg0: i32) -> (i32, i32) {
    %c0_i32 = arith.constant 0 : i32
    %c0_i32_0 = arith.constant 0 : i32
    %c0_i32_1 = arith.constant 0 : i32
    return %c0_i32, %c0_i32_0 : i32, i32
  }
  func.func @transform_1(%arg0: i32) -> (i32, i32) {
    %c0_i32 = arith.constant 0 : i32
    %c0_i32_0 = arith.constant 0 : i32
    return %c0_i32, %arg0 : i32, i32
  }
  func.func @transform_2(%arg0: i32) -> (i32, i32) {
    %c0_i32 = arith.constant 0 : i32
    %c0_i32_0 = arith.constant 0 : i32
    %c0_i32_1 = arith.constant 0 : i32
    return %c0_i32, %c0_i32_0 : i32, i32
  }
  func.func @transform_3(%arg0: i32) -> (i32, i32) {
    %c0_i32 = arith.constant 0 : i32
    %c0_i32_0 = arith.constant 0 : i32
    %c0_i32_1 = arith.constant 0 : i32
    return %c0_i32, %c0_i32_0 : i32, i32
  }
  func.func @transform_4(%arg0: i32) -> (i32, i32) {
    %c0_i32 = arith.constant 0 : i32
    %c0_i32_0 = arith.constant 0 : i32
    return %c0_i32, %arg0 : i32, i32
  }
}

module attributes {stable_mosaic.version = 11 : i64} {
  func.func @_head_kernel(%arg0: i32, %arg1: memref<8x512xbf16, #tpu.memory_space<vmem>>, %arg2: memref<512x256xbf16, #tpu.memory_space<vmem>>, %arg3: memref<1x256xf32, #tpu.memory_space<vmem>>, %arg4: memref<256x128xbf16, #tpu.memory_space<vmem>>, %arg5: memref<1x128xf32, #tpu.memory_space<vmem>>, %arg6: memref<8x128xf32, #tpu.memory_space<vmem>>, %arg7: memref<8x256xf32, #tpu.memory_space<vmem>>) attributes {dimension_semantics = [#tpu.dimension_semantics<arbitrary>], iteration_bounds = array<i64: 1>, scalar_prefetch = 0 : i64, scratch_operands = 1 : i64, tpu.core_type = #tpu.core_type<tc>, window_params = [{transform_indices = @transform_0, window_bounds = array<i64: 8, 512>}, {transform_indices = @transform_1, window_bounds = array<i64: 512, 256>}, {pipeline_mode = #tpu.pipeline_mode<synchronous>, transform_indices = @transform_2, window_bounds = array<i64: 1, 256>}, {pipeline_mode = #tpu.pipeline_mode<synchronous>, transform_indices = @transform_3, window_bounds = array<i64: 256, 128>}, {pipeline_mode = #tpu.pipeline_mode<synchronous>, transform_indices = @transform_4, window_bounds = array<i64: 1, 128>}, {pipeline_mode = #tpu.pipeline_mode<synchronous>, transform_indices = @transform_5, window_bounds = array<i64: 8, 128>}]} {
    %c0_i32 = arith.constant 0 : i32
    %0 = arith.cmpi eq, %arg0, %c0_i32 : i32
    %1 = arith.extui %0 : i1 to i32
    %c0_i32_0 = arith.constant 0 : i32
    %2 = arith.cmpi ne, %1, %c0_i32_0 : i32
    scf.if %2 {
      %cst_10 = arith.constant 0.000000e+00 : f32
      %12 = vector.broadcast %cst_10 : f32 to vector<8x256xf32>
      %c0_11 = arith.constant 0 : index
      %c0_12 = arith.constant 0 : index
      %13 = vector.load %arg7[%c0_11, %c0_12] : memref<8x256xf32, #tpu.memory_space<vmem>>, vector<8x256xf32>
      tpu.vector_store %arg7[%c0_11, %c0_12], %12 {strides = array<i32>} : memref<8x256xf32, #tpu.memory_space<vmem>>, vector<8x256xf32>,
    } else {
    }
    %c0 = arith.constant 0 : index
    %c0_1 = arith.constant 0 : index
    %3 = vector.load %arg7[%c0, %c0_1] : memref<8x256xf32, #tpu.memory_space<vmem>>, vector<8x256xf32>
    %c0_2 = arith.constant 0 : index
    %c0_3 = arith.constant 0 : index
    %4 = vector.load %arg1[%c0_2, %c0_3] : memref<8x512xbf16, #tpu.memory_space<vmem>>, vector<8x512xbf16>
    %c0_4 = arith.constant 0 : index
    %c0_5 = arith.constant 0 : index
    %5 = vector.load %arg2[%c0_4, %c0_5] : memref<512x256xbf16, #tpu.memory_space<vmem>>, vector<512x256xbf16>
    %cst = arith.constant dense<0.000000e+00> : vector<8x256xf32>
    %6 = tpu.matmul %4, %5, %cst {dimension_numbers = #tpu.dot_dimension_numbers<[1], [0], [0], [1], [0, 0, 1, 1], [], []>} : vector<8x512xbf16>, vector<512x256xbf16>, vector<8x256xf32> -> vector<8x256xf32>
    %7 = arith.addf %3, %6 : vector<8x256xf32>
    %c0_6 = arith.constant 0 : index
    %c0_7 = arith.constant 0 : index
    %8 = vector.load %arg7[%c0_6, %c0_7] : memref<8x256xf32, #tpu.memory_space<vmem>>, vector<8x256xf32>
    tpu.vector_store %arg7[%c0_6, %c0_7], %7 {strides = array<i32>} : memref<8x256xf32, #tpu.memory_space<vmem>>, vector<8x256xf32>,
    %c0_i32_8 = arith.constant 0 : i32
    %9 = arith.cmpi eq, %arg0, %c0_i32_8 : i32
    %10 = arith.extui %9 : i1 to i32
    %c0_i32_9 = arith.constant 0 : i32
    %11 = arith.cmpi ne, %10, %c0_i32_9 : i32
    scf.if %11 {
      %c0_10 = arith.constant 0 : index
      %c0_11 = arith.constant 0 : index
      %12 = vector.load %arg7[%c0_10, %c0_11] : memref<8x256xf32, #tpu.memory_space<vmem>>, vector<8x256xf32>
      %c0_12 = arith.constant 0 : index
      %c0_13 = arith.constant 0 : index
      %13 = vector.load %arg3[%c0_12, %c0_13] : memref<1x256xf32, #tpu.memory_space<vmem>>, vector<1x256xf32>
      %14 = vector.broadcast %13 : vector<1x256xf32> to vector<8x256xf32>
      %15 = arith.addf %12, %14 : vector<8x256xf32>
      %cst_14 = arith.constant 0.000000e+00 : f32
      %16 = vector.broadcast %cst_14 : f32 to vector<8x256xf32>
      %17 = arith.cmpf oge, %15, %16 : vector<8x256xf32>
      %cst_15 = arith.constant 2.000000e-01 : f32
      %18 = vector.broadcast %cst_15 : f32 to vector<8x256xf32>
      %19 = arith.mulf %18, %15 : vector<8x256xf32>
      %20 = arith.select %17, %15, %19 : vector<8x256xi1>, vector<8x256xf32>
      %21 = arith.truncf %20 : vector<8x256xf32> to vector<8x256xbf16>
      %c0_16 = arith.constant 0 : index
      %c0_17 = arith.constant 0 : index
      %22 = vector.load %arg4[%c0_16, %c0_17] : memref<256x128xbf16, #tpu.memory_space<vmem>>, vector<256x128xbf16>
      %cst_18 = arith.constant dense<0.000000e+00> : vector<8x128xf32>
      %23 = tpu.matmul %21, %22, %cst_18 {dimension_numbers = #tpu.dot_dimension_numbers<[1], [0], [0], [1], [0, 0, 1, 1], [], []>} : vector<8x256xbf16>, vector<256x128xbf16>, vector<8x128xf32> -> vector<8x128xf32>
      %c0_19 = arith.constant 0 : index
      %c0_20 = arith.constant 0 : index
      %24 = vector.load %arg5[%c0_19, %c0_20] : memref<1x128xf32, #tpu.memory_space<vmem>>, vector<1x128xf32>
      %25 = vector.broadcast %24 : vector<1x128xf32> to vector<8x128xf32>
      %26 = arith.addf %23, %25 : vector<8x128xf32>
      %c0_21 = arith.constant 0 : index
      %c0_22 = arith.constant 0 : index
      %27 = vector.load %arg6[%c0_21, %c0_22] : memref<8x128xf32, #tpu.memory_space<vmem>>, vector<8x128xf32>
      tpu.vector_store %arg6[%c0_21, %c0_22], %26 {strides = array<i32>} : memref<8x128xf32, #tpu.memory_space<vmem>>, vector<8x128xf32>,
    } else {
    }
    return
  }
  func.func @transform_0(%arg0: i32) -> (i32, i32) {
    %c0_i32 = arith.constant 0 : i32
    %c0_i32_0 = arith.constant 0 : i32
    return %c0_i32, %arg0 : i32, i32
  }
  func.func @transform_1(%arg0: i32) -> (i32, i32) {
    %c0_i32 = arith.constant 0 : i32
    %c0_i32_0 = arith.constant 0 : i32
    return %arg0, %c0_i32 : i32, i32
  }
  func.func @transform_2(%arg0: i32) -> (i32, i32) {
    %c0_i32 = arith.constant 0 : i32
    %c0_i32_0 = arith.constant 0 : i32
    %c0_i32_1 = arith.constant 0 : i32
    return %c0_i32, %c0_i32_0 : i32, i32
  }
  func.func @transform_3(%arg0: i32) -> (i32, i32) {
    %c0_i32 = arith.constant 0 : i32
    %c0_i32_0 = arith.constant 0 : i32
    %c0_i32_1 = arith.constant 0 : i32
    return %c0_i32, %c0_i32_0 : i32, i32
  }
  func.func @transform_4(%arg0: i32) -> (i32, i32) {
    %c0_i32 = arith.constant 0 : i32
    %c0_i32_0 = arith.constant 0 : i32
    %c0_i32_1 = arith.constant 0 : i32
    return %c0_i32, %c0_i32_0 : i32, i32
  }
  func.func @transform_5(%arg0: i32) -> (i32, i32) {
    %c0_i32 = arith.constant 0 : i32
    %c0_i32_0 = arith.constant 0 : i32
    %c0_i32_1 = arith.constant 0 : i32
    return %c0_i32, %c0_i32_0 : i32, i32
  }
}

</mosaic_0001>

<bundles_post_ra>
// kernel: cnn_classifier_forward.4
= control target key start
LH: loop header
LB: loop body
LE: loop exit
PB: predicated region body
PF: predicated region fallthrough
CT: control target
= control target key end

     0   :  { %v269_v1 = vmov 0   ;;  %vm91_vm0 = vcmask 392192   ;;  %s346_s1 = inlined_call_operand.vmem [shape: bf16[48,512], index: 1, kind: input, shape index: {}]   ;;  %s347_s2 = inlined_call_operand.vmem [shape: f32[8,1], index: 2, kind: input, shape index: {}]   ;;  %s348_s3 = inlined_call_operand.vmem [shape: f32[8,1], index: 3, kind: input, shape index: {}]   ;;  %s349_s0 = inlined_call_operand.vmem [shape: bf16[8,48], index: 0, kind: input, shape index: {}]   ;;  %s350_s4 = inlined_call_operand.vmem [shape: bf16[8,512], index: 4, kind: output, shape index: {}]  }
   0x1   :  { %v251_v0 = vld [vmem:[%s346_s1 + $0x4] ss:$16 sps:$4 sm:$0xff]   ;;  %127 = vmatprep.mubr.bf16.mxu0 %v269_v1  ;;  %168 = vmatprep.mubr.bf16.mxu1 %v269_v1  ;;  %v253_v2 = vld [vmem:[%s346_s1 + $0xc] ss:$16 sps:$4 sm:$0xff]   ;;  %v255_v3 = vld [vmem:[%s346_s1] ss:$16 sps:$4 sm:$0xff]  }
   0x2   :  { %250 = vset.pattern.permute.xlu0 %v269_v1  ;;  %95 = vmatprep.subr.bf16.mxu0 %v251_v0  ;;  %v256_v4 = vld [vmem:[%s346_s1 + $0x8] ss:$16 sps:$4 sm:$0xff]   ;;  %v257_v5 = vld [vmem:[%s346_s1 + $0x24] ss:$16 sps:$4 sm:$0xff]   ;;  %v259_v6 = vld [vmem:[%s346_s1 + $0x2c] ss:$16 sps:$4 sm:$0xff]  }
   0x3   :  { %136 = vmatprep.subr.bf16.mxu1 %v253_v2  ;;  %96 = vmatpush1.bf16.msra.mxu0 %v255_v3  ;;  %v261_v7 = vld [vmem:[%s346_s1 + $0x20] ss:$16 sps:$4 sm:$0xff]   ;;  %v262_v8 = vld [vmem:[%s346_s1 + $0x28] ss:$16 sps:$4 sm:$0xff]   ;;  %v263_v9 = vld [vmem:[%s346_s1 + $0x44] ss:$16 sps:$4 sm:$0xff]  }
   0x4   :  { %137 = vmatpush1.bf16.msra.mxu1 %v256_v4  ;;  %97 = vmatprep.subr.bf16.mxu0 %v257_v5  ;;  %v265_v10 = vld [vmem:[%s346_s1 + $0x4c] ss:$16 sps:$4 sm:$0xff]   ;;  %v267_v11 = vld [vmem:[%s346_s1 + $0x40] ss:$16 sps:$4 sm:$0xff]   ;;  %v268_v12 = vld [vmem:[%s346_s1 + $0x48] ss:$16 sps:$4 sm:$0xff]  }
   0x5   :  { %138 = vmatprep.subr.bf16.mxu1 %v259_v6  ;;  %v177_v13 = vld [vmem:[%s347_s2] sm:$0xff] }
   0x6   :  { %180 = vperm.xlu0 %250, %v177_v13   ;;  %v187_v14 = vld [vmem:[%s348_s3] sm:$0xff] }
   0x7   :  { %98 = vmatpush1.bf16.msra.mxu0 %v261_v7  ;;  %v18_v15 = vld [vmem:[%s349_s0] sm:$0xf] }
   0x8   :  { %139 = vmatpush1.bf16.msra.mxu1 %v262_v8  ;;  %99 = vmatprep.subr.bf16.mxu0 %v263_v9 }
   0x9   :  { %140 = vmatprep.subr.bf16.mxu1 %v265_v10 }
   0xa   :  { %190 = vperm.xlu0 %250, %v187_v14  }
   0xb   :  { %100 = vmatpush1.bf16.msra.mxu0 %v267_v11 }
   0xc   :  { %141 = vmatpush1.bf16.msra.mxu1 %v268_v12 }
   0xe   :  { %243 = vmatmul.mubr.msk.bf16.vlgmr.msra.gmra.mrb[0].mxu0 %vm91_vm0, %v18_v15 }
   0xf   :  { %244 = vmatmul.mubr.msk.bf16.vlgmr.msra.gmra.mrb[0].mxu1 %vm91_vm0, %v18_v15 }
  0x85   :  { %v181_v16 = vpop.permute.xlu0 %180 }
  0x89   :  { %v191_v17 = vpop.permute.xlu0 %190 }
  0xe1   :  { %v129_v18 = vpop.f32.mrb[0].mxu0 }
  0xe2   :  { %v170_v19 = vpop.f32.mrb[0].mxu1  ;;  %v183_v20 = vmul.f32 %v181_v16, %v129_v18  ;;  %v131_v22 = vpop.f32.mrb[1].mxu0 }
  0xe3   :  { %v185_v21 = vmul.f32 %v181_v16, %v170_v19  ;;  %v172_v23 = vpop.f32.mrb[1].mxu1  ;;  %v184_v24 = vmul.f32 %v181_v16, %v131_v22  ;;  %v133_v26 = vpop.f32.mrb[2].mxu0 }
  0xe4   :  { %v186_v25 = vmul.f32 %v181_v16, %v172_v23  ;;  %v174_v27 = vpop.f32.mrb[2].mxu1  ;;  %v193_v28 = vadd.f32 %v191_v17, %v183_v20  ;;  %v134_v30 = vpop.f32.mrb[3].mxu0 }
  0xe5   :  { %v195_v29 = vadd.f32 %v191_v17, %v185_v21  ;;  %v175_v31 = vpop.f32.mrb[3].mxu1  ;;  %v194_v32 = vadd.f32 %v191_v17, %v184_v24 }
  0xe6   :  { %v196_v33 = vadd.f32 %v191_v17, %v186_v25  ;;  %vm197_vm1 = vcmp.ge.f32.partialorder %v193_v28, 0.0  ;;  %v201_v34 = vmul.f32 0.2, %v193_v28 }
  0xe7   :  { %vm199_vm2 = vcmp.ge.f32.partialorder %v195_v29, 0.0  ;;  %v203_v35 = vmul.f32 0.2, %v195_v29  ;;  %vm198_vm3 = vcmp.ge.f32.partialorder %v194_v32, 0.0  ;;  %v202_v36 = vmul.f32 0.2, %v194_v32 }
  0xe8   :  { %vm200_vm4 = vcmp.ge.f32.partialorder %v196_v33, 0.0  ;;  %v204_v37 = vmul.f32 0.2, %v196_v33  ;;  %v205_v38 = vsel %vm197_vm1, %v193_v28, %v201_v34 }
  0xe9   :  { %v207_v39 = vsel %vm199_vm2, %v195_v29, %v203_v35  ;;  %v206_v40 = vsel %vm198_vm3, %v194_v32, %v202_v36 }
  0xea   :  { %v208_v41 = vsel %vm200_vm4, %v196_v33, %v204_v37  ;;  %v247_v42 = vpack.c.bf16 %v206_v40, %v205_v38 }
  0xeb   :  { %v248_v43 = vpack.c.bf16 %v208_v41, %v207_v39 }
  0xec   :  { %225 = vst [vmem:[%s350_s4] sm:$0xff] %v247_v42 }
  0xed   :  { %226 = vst [vmem:[%s350_s4 + $0x8] sm:$0xff] %v248_v43 }

// kernel: cnn_classifier_forward.5
= control target key start
LH: loop header
LB: loop body
LE: loop exit
PB: predicated region body
PF: predicated region fallthrough
CT: control target
= control target key end

     0   :  { %v240_v0 = vmov 0.0   ;;  %vm241_vm0 = vmmov 0   ;;  %v242_v2 = vmov 0   ;;  %s310_s1 = inlined_call_operand.vmem [shape: bf16[128,128], index: 1, kind: input, shape index: {}]   ;;  %s311_s2 = inlined_call_operand.vmem [shape: f32[16,1], index: 2, kind: input, shape index: {}]   ;;  %s312_s3 = inlined_call_operand.vmem [shape: f32[16,1], index: 3, kind: input, shape index: {}]   ;;  %s313_s0 = inlined_call_operand.vmem [shape: bf16[16,128], index: 0, kind: input, shape index: {}]   ;;  %s314_s4 = inlined_call_operand.vmem [shape: bf16[16,128], index: 4, kind: output, shape index: {}]  }
   0x1   :  { %206 = vmatprep.subr.bf16.mxu0 %v240_v0  ;;  %v231_v1 = vld [vmem:[%s310_s1] sm:$0xff]   ;;  %222 = vmatprep.mubr.msk.bf16.mxu0 %vm241_vm0, %v240_v0  ;;  %v232_v3 = vld [vmem:[%s310_s1 + $0x8] sm:$0xff]   ;;  %v233_v4 = vld [vmem:[%s310_s1 + $0x10] sm:$0xff]  }
   0x2   :  { %229 = vset.pattern.permute.xlu0 %v242_v2  ;;  %230 = vset.pattern.permute.xlu1 %v242_v2  ;;  %v131_v5 = vld [vmem:[%s311_s2] sm:$0xff]  ;;  %v234_v7 = vld [vmem:[%s310_s1 + $0x18] sm:$0xff]   ;;  %v132_v8 = vld [vmem:[%s311_s2 + $0x8] sm:$0xff] }
   0x3   :  { %207 = vmatpush3.bf16.msra.mxu0 %v231_v1  ;;  %v145_v6 = vld [vmem:[%s312_s3] sm:$0xff]  ;;  %135 = vperm.xlu0 %229, %v131_v5   ;;  %v146_v9 = vld [vmem:[%s312_s3 + $0x8] sm:$0xff]  ;;  %v237_v12 = vld [vmem:[%s310_s1 + $0x30] sm:$0xff]  }
   0x4   :  { %208 = vmatprep.subr.bf16.mxu0 %v240_v0  ;;  %149 = vperm.xlu1 %230, %v145_v6   ;;  %v235_v10 = vld [vmem:[%s310_s1 + $0x20] sm:$0xff]   ;;  %v236_v11 = vld [vmem:[%s310_s1 + $0x28] sm:$0xff]   ;;  %v238_v13 = vld [vmem:[%s310_s1 + $0x38] sm:$0xff]  }
   0x5   :  { %v239_v14 = vld [vmem:[%s313_s0] sm:$0xff]  }
   0x7   :  { %209 = vmatpush3.bf16.msra.mxu0 %v232_v3  ;;  %140 = vperm.xlu0 %229, %v132_v8  }
   0x8   :  { %210 = vmatprep.subr.bf16.mxu0 %v240_v0  ;;  %154 = vperm.xlu1 %230, %v146_v9  }
   0xb   :  { %211 = vmatpush3.bf16.msra.mxu0 %v233_v4 }
   0xc   :  { %212 = vmatprep.subr.bf16.mxu0 %v240_v0 }
   0xf   :  { %213 = vmatpush3.bf16.msra.mxu0 %v234_v7 }
  0x10   :  { %214 = vmatprep.subr.bf16.mxu0 %v240_v0 }
  0x13   :  { %215 = vmatpush3.bf16.msra.mxu0 %v235_v10 }
  0x14   :  { %216 = vmatprep.subr.bf16.mxu0 %v240_v0 }
  0x17   :  { %217 = vmatpush3.bf16.msra.mxu0 %v236_v11 }
  0x18   :  { %218 = vmatprep.subr.bf16.mxu0 %v240_v0 }
  0x1b   :  { %219 = vmatpush3.bf16.msra.mxu0 %v237_v12 }
  0x1c   :  { %220 = vmatprep.subr.bf16.mxu0 %v240_v0 }
  0x1f   :  { %221 = vmatpush3.bf16.msra.mxu0 %v238_v13 }
  0x22   :  { %223 = vmatmul.mubr.bf16.vlgmr.msra.gmra.mrb[0].mxu0 %v239_v14 }
  0x82   :  { %v136_v15 = vpop.permute.xlu0 %135 }
  0x83   :  { %v150_v16 = vpop.permute.xlu1 %149 }
  0x86   :  { %v141_v20 = vpop.permute.xlu0 %140 }
  0x87   :  { %v155_v25 = vpop.permute.xlu1 %154 }
  0xf5   :  { %v124_v17 = vpop.f32.mrb[0].mxu0 }
  0xf6   :  { %v143_v18 = vmul.f32 %v136_v15, %v124_v17  ;;  %v224_v19 = vpop.f32.mrb[1].mxu0 }
  0xf7   :  { %v127_v21 = vpop.f32.mrb[2].mxu0 }
  0xf8   :  { %v157_v22 = vadd.f32 %v150_v16, %v143_v18  ;;  %v144_v23 = vmul.f32 %v141_v20, %v127_v21  ;;  %v225_v24 = vpop.f32.mrb[3].mxu0 }
  0xfa   :  { %v161_v26 = vmul.f32 0.2, %v157_v22  ;;  %v158_v27 = vadd.f32 %v155_v25, %v144_v23  ;;  %vm159_vm1 = vcmp.ge.f32.partialorder %v157_v22, 0.0 }
  0xfc   :  { %vm160_vm2 = vcmp.ge.f32.partialorder %v158_v27, 0.0  ;;  %v162_v28 = vmul.f32 0.2, %v158_v27  ;;  %v163_v29 = vsel %vm159_vm1, %v157_v22, %v161_v26 }
  0xfe   :  { %v164_v30 = vsel %vm160_vm2, %v158_v27, %v162_v28 }
  0xff   :  { %v195_v31 = vpack.c.bf16 %v164_v30, %v163_v29 }
 0x101   :  { %196 = vst [vmem:[%s314_s4] sm:$0xff] %v195_v31  }

// kernel: cnn_classifier_forward.6
= control target key start
LH: loop header
LB: loop body
LE: loop exit
PB: predicated region body
PF: predicated region fallthrough
CT: control target
= control target key end

     0   :  { %v419_v1 = vmov 0   ;;  %s535_s1 = inlined_call_operand.vmem [shape: bf16[256,128], index: 1, kind: input, shape index: {}]   ;;  %s536_s0 = inlined_call_operand.vmem [shape: bf16[32,256], index: 0, kind: input, shape index: {}]   ;;  %s537_s2 = inlined_call_operand.vmem [shape: f32[32,1], index: 2, kind: input, shape index: {}]   ;;  %s538_s3 = inlined_call_operand.vmem [shape: f32[32,1], index: 3, kind: input, shape index: {}]   ;;  %s539_s4 = inlined_call_operand.vmem [shape: bf16[32,128], index: 4, kind: output, shape index: {}]  }
   0x1   :  { %v397_v0 = vld [vmem:[%s535_s1 + $0x40] sm:$0xff]   ;;  %396 = vset.pattern.permute.xlu1 %v419_v1  ;;  %395 = vset.pattern.permute.xlu0 %v419_v1  ;;  %v399_v3 = vld [vmem:[%s535_s1 + $0x48] sm:$0xff]   ;;  %v401_v5 = vld [vmem:[%s535_s1 + $0x50] sm:$0xff]  }
   0x2   :  { %v398_v2 = vld [vmem:[%s535_s1] sm:$0xff]   ;;  %350 = vmatprep.subr.bf16.mxu0 %v397_v0  ;;  %378 = vmatprep.subr.bf16.mxu1 %v397_v0  ;;  %v400_v4 = vld [vmem:[%s535_s1 + $0x8] sm:$0xff]   ;;  %v402_v6 = vld [vmem:[%s535_s1 + $0x10] sm:$0xff]  }
   0x3   :  { %351 = vmatpush3.bf16.msra.mxu0 %v398_v2  ;;  %386 = vmatpush3.bf16.msra.mxu1 %v398_v2  ;;  %v403_v7 = vld [vmem:[%s535_s1 + $0x58] sm:$0xff]   ;;  %v405_v9 = vld [vmem:[%s535_s1 + $0x60] sm:$0xff]   ;;  %v407_v11 = vld [vmem:[%s535_s1 + $0x68] sm:$0xff]  }
   0x4   :  { %352 = vmatprep.subr.bf16.mxu0 %v399_v3  ;;  %379 = vmatprep.subr.bf16.mxu1 %v399_v3  ;;  %v404_v8 = vld [vmem:[%s535_s1 + $0x18] sm:$0xff]   ;;  %v406_v10 = vld [vmem:[%s535_s1 + $0x20] sm:$0xff]   ;;  %v408_v14 = vld [vmem:[%s535_s1 + $0x28] sm:$0xff]  }
   0x5   :  { %v415_v12 = vld [vmem:[%s536_s0 + $0x4] ss:$8 sps:$4 sm:$0xff]   ;;  %v418_v13 = vld [vmem:[%s536_s0 + $0x14] ss:$8 sps:$4 sm:$0xff]   ;;  %v413_v25 = vld [vmem:[%s536_s0] ss:$8 sps:$4 sm:$0xff]  }
   0x6   :  { %v221_v15 = vld [vmem:[%s537_s2 + $0x10] sm:$0xff]  ;;  %v219_v16 = vld [vmem:[%s537_s2] sm:$0xff]  ;;  %202 = vmatprep.mubr.bf16.mxu0 %v415_v12  ;;  %210 = vmatprep.mubr.bf16.mxu1 %v418_v13  ;;  %v222_v19 = vld [vmem:[%s537_s2 + $0x18] sm:$0xff] }
   0x7   :  { %353 = vmatpush3.bf16.msra.mxu0 %v400_v4  ;;  %387 = vmatpush3.bf16.msra.mxu1 %v400_v4  ;;  %v409_v17 = vld [vmem:[%s535_s1 + $0x70] sm:$0xff]   ;;  %v220_v20 = vld [vmem:[%s537_s2 + $0x8] sm:$0xff]  ;;  %v411_v21 = vld [vmem:[%s535_s1 + $0x78] sm:$0xff]  }
   0x8   :  { %354 = vmatprep.subr.bf16.mxu0 %v401_v5  ;;  %380 = vmatprep.subr.bf16.mxu1 %v401_v5  ;;  %v410_v18 = vld [vmem:[%s535_s1 + $0x30] sm:$0xff]   ;;  %v412_v22 = vld [vmem:[%s535_s1 + $0x38] sm:$0xff]   ;;  %v248_v23 = vld [vmem:[%s538_s3 + $0x8] sm:$0xff] }
   0x9   :  { %235 = vperm.xlu1 %396, %v221_v15   ;;  %225 = vperm.xlu0 %395, %v219_v16   ;;  %v247_v24 = vld [vmem:[%s538_s3] sm:$0xff]  ;;  %v416_v26 = vld [vmem:[%s536_s0 + $0x10] ss:$8 sps:$4 sm:$0xff]  }
   0xa   :  { %v250_v27 = vld [vmem:[%s538_s3 + $0x18] sm:$0xff]  ;;  %v249_v28 = vld [vmem:[%s538_s3 + $0x10] sm:$0xff] }
   0xb   :  { %355 = vmatpush3.bf16.msra.mxu0 %v402_v6  ;;  %388 = vmatpush3.bf16.msra.mxu1 %v402_v6 }
   0xc   :  { %356 = vmatprep.subr.bf16.mxu0 %v403_v7  ;;  %381 = vmatprep.subr.bf16.mxu1 %v403_v7 }
   0xd   :  { %240 = vperm.xlu1 %396, %v222_v19   ;;  %230 = vperm.xlu0 %395, %v220_v20  }
   0xf   :  { %357 = vmatpush3.bf16.msra.mxu0 %v404_v8  ;;  %389 = vmatpush3.bf16.msra.mxu1 %v404_v8 }
  0x10   :  { %358 = vmatprep.subr.bf16.mxu0 %v405_v9  ;;  %382 = vmatprep.subr.bf16.mxu1 %v405_v9 }
  0x11   :  { %258 = vperm.xlu1 %396, %v248_v23   ;;  %253 = vperm.xlu0 %395, %v247_v24  }
  0x13   :  { %359 = vmatpush3.bf16.msra.mxu0 %v406_v10  ;;  %390 = vmatpush3.bf16.msra.mxu1 %v406_v10 }
  0x14   :  { %360 = vmatprep.subr.bf16.mxu0 %v407_v11  ;;  %383 = vmatprep.subr.bf16.mxu1 %v407_v11 }
  0x15   :  { %268 = vperm.xlu1 %396, %v250_v27   ;;  %263 = vperm.xlu0 %395, %v249_v28  }
  0x17   :  { %361 = vmatpush3.bf16.msra.mxu0 %v408_v14  ;;  %391 = vmatpush3.bf16.msra.mxu1 %v408_v14 }
  0x18   :  { %362 = vmatprep.subr.bf16.mxu0 %v409_v17  ;;  %384 = vmatprep.subr.bf16.mxu1 %v409_v17 }
  0x1b   :  { %363 = vmatpush3.bf16.msra.mxu0 %v410_v18  ;;  %392 = vmatpush3.bf16.msra.mxu1 %v410_v18 }
  0x1c   :  { %364 = vmatprep.subr.bf16.mxu0 %v411_v21  ;;  %385 = vmatprep.subr.bf16.mxu1 %v411_v21 }
  0x1f   :  { %365 = vmatpush3.bf16.msra.mxu0 %v412_v22  ;;  %393 = vmatpush3.bf16.msra.mxu1 %v412_v22 }
  0x22   :  { %203 = vmatmul.mubr.bf16.vlgmr.msra.gmra.mrb[0].mxu0 %v413_v25  ;;  %211 = vmatmul.mubr.bf16.vlgmr.msra.gmra.mrb[0].mxu1 %v416_v26 }
  0x88   :  { %v236_v29 = vpop.permute.xlu1 %235  ;;  %v226_v30 = vpop.permute.xlu0 %225 }
  0x8c   :  { %v241_v31 = vpop.permute.xlu1 %240  ;;  %v231_v32 = vpop.permute.xlu0 %230 }
  0x90   :  { %v259_v33 = vpop.permute.xlu1 %258  ;;  %v254_v34 = vpop.permute.xlu0 %253 }
  0x94   :  { %v264_v49 = vpop.permute.xlu0 %263  ;;  %v269_v54 = vpop.permute.xlu1 %268 }
  0xf5   :  { %v366_v35 = vpop.f32.mrb[0].mxu0  ;;  %v372_v36 = vpop.f32.mrb[0].mxu1 }
  0xf6   :  { %v367_v37 = vpop.f32.mrb[1].mxu0  ;;  %v373_v38 = vpop.f32.mrb[1].mxu1 }
  0xf7   :  { %v368_v39 = vadd.f32 %v367_v37, %v366_v35  ;;  %v374_v40 = vadd.f32 %v373_v38, %v372_v36  ;;  %v369_v41 = vpop.f32.mrb[2].mxu0  ;;  %v375_v42 = vpop.f32.mrb[2].mxu1 }
  0xf8   :  { %v370_v43 = vpop.f32.mrb[3].mxu0  ;;  %v376_v44 = vpop.f32.mrb[3].mxu1 }
  0xf9   :  { %v243_v45 = vmul.f32 %v368_v39, %v226_v30  ;;  %v245_v46 = vmul.f32 %v374_v40, %v236_v29  ;;  %v371_v47 = vadd.f32 %v370_v43, %v369_v41  ;;  %v377_v48 = vadd.f32 %v376_v44, %v375_v42 }
  0xfb   :  { %v271_v50 = vadd.f32 %v254_v34, %v243_v45  ;;  %v273_v51 = vadd.f32 %v264_v49, %v245_v46  ;;  %v244_v52 = vmul.f32 %v371_v47, %v231_v32  ;;  %v246_v53 = vmul.f32 %v377_v48, %v241_v31 }
  0xfd   :  { %v279_v55 = vmul.f32 0.2, %v271_v50  ;;  %v281_v56 = vmul.f32 0.2, %v273_v51  ;;  %v272_v57 = vadd.f32 %v259_v33, %v244_v52  ;;  %v274_v58 = vadd.f32 %v269_v54, %v246_v53 }
  0xfe   :  { %vm275_vm0 = vcmp.ge.f32.partialorder %v271_v50, 0.0  ;;  %vm277_vm1 = vcmp.ge.f32.partialorder %v273_v51, 0.0 }
  0xff   :  { %vm276_vm2 = vcmp.ge.f32.partialorder %v272_v57, 0.0  ;;  %v280_v59 = vmul.f32 0.2, %v272_v57  ;;  %vm278_vm3 = vcmp.ge.f32.partialorder %v274_v58, 0.0  ;;  %v282_v60 = vmul.f32 0.2, %v274_v58 }
 0x100   :  { %v283_v61 = vsel %vm275_vm0, %v271_v50, %v279_v55  ;;  %v285_v62 = vsel %vm277_vm1, %v273_v51, %v281_v56 }
 0x101   :  { %v284_v63 = vsel %vm276_vm2, %v272_v57, %v280_v59  ;;  %v286_v0 = vsel %vm278_vm3, %v274_v58, %v282_v60 }
 0x102   :  { %v342_v1 = vpack.c.bf16 %v284_v63, %v283_v61  ;;  %v347_v2 = vpack.c.bf16 %v286_v0, %v285_v62 }
 0x104   :  { %343 = vst [vmem:[%s539_s4] sm:$0xff] %v342_v1   ;;  %349 = vst [vmem:[%s539_s4 + $0x8] sm:$0xff] %v347_v2  }

// kernel: cnn_classifier_forward.7
= control target key start
LH: loop header
LB: loop body
LE: loop exit
PB: predicated region body
PF: predicated region fallthrough
CT: control target
= control target key end

     0   :  { %s1230_s1 = inlined_call_operand.vmem [shape: bf16[512,256], index: 1, kind: input, shape index: {}]   ;;  %s1231_s0 = inlined_call_operand.vmem [shape: bf16[8,512], index: 0, kind: input, shape index: {}]   ;;  %s1232_s3 = inlined_call_operand.vmem [shape: bf16[256,128], index: 3, kind: input, shape index: {}]   ;;  %s1233_s2 = inlined_call_operand.vmem [shape: f32[1,256], index: 2, kind: input, shape index: {}]   ;;  %s1234_s4 = inlined_call_operand.vmem [shape: f32[1,128], index: 4, kind: input, shape index: {}]   ;;  %s1235_s5 = inlined_call_operand.vmem [shape: f32[8,128], index: 5, kind: output, shape index: {}]  }
   0x1   :  { %v829_v0 = vld [vmem:[%s1230_s1 + $0x4] ss:$8 sps:$4 sm:$0xff]   ;;  %v833_v2 = vld [vmem:[%s1230_s1] ss:$8 sps:$4 sm:$0xff]   ;;  %v835_v4 = vld [vmem:[%s1230_s1 + $0x14] ss:$8 sps:$4 sm:$0xff]  }
   0x2   :  { %v831_v1 = vld [vmem:[%s1230_s1 + $0x104] ss:$8 sps:$4 sm:$0xff]   ;;  %429 = vmatprep.subr.bf16.mxu0 %v829_v0  ;;  %v834_v3 = vld [vmem:[%s1230_s1 + $0x100] ss:$8 sps:$4 sm:$0xff]   ;;  %v837_v5 = vld [vmem:[%s1230_s1 + $0x114] ss:$8 sps:$4 sm:$0xff]  }
   0x3   :  { %470 = vmatprep.subr.bf16.mxu1 %v831_v1  ;;  %430 = vmatpush1.bf16.msra.mxu0 %v833_v2  ;;  %v839_v6 = vld [vmem:[%s1230_s1 + $0x10] ss:$8 sps:$4 sm:$0xff]   ;;  %v841_v8 = vld [vmem:[%s1230_s1 + $0x24] ss:$8 sps:$4 sm:$0xff]   ;;  %v845_v10 = vld [vmem:[%s1230_s1 + $0x20] ss:$8 sps:$4 sm:$0xff]  }
   0x4   :  { %471 = vmatpush1.bf16.msra.mxu1 %v834_v3  ;;  %431 = vmatprep.subr.bf16.mxu0 %v835_v4  ;;  %v840_v7 = vld [vmem:[%s1230_s1 + $0x110] ss:$8 sps:$4 sm:$0xff]   ;;  %v843_v9 = vld [vmem:[%s1230_s1 + $0x124] ss:$8 sps:$4 sm:$0xff]   ;;  %v846_v11 = vld [vmem:[%s1230_s1 + $0x120] ss:$8 sps:$4 sm:$0xff]  }
   0x5   :  { %472 = vmatprep.subr.bf16.mxu1 %v837_v5  ;;  %v847_v12 = vld [vmem:[%s1230_s1 + $0x34] ss:$8 sps:$4 sm:$0xff]   ;;  %v851_v14 = vld [vmem:[%s1230_s1 + $0x30] ss:$8 sps:$4 sm:$0xff]   ;;  %v853_v16 = vld [vmem:[%s1230_s1 + $0x44] ss:$8 sps:$4 sm:$0xff]  }
   0x6   :  { %v849_v13 = vld [vmem:[%s1230_s1 + $0x134] ss:$8 sps:$4 sm:$0xff]   ;;  %v852_v15 = vld [vmem:[%s1230_s1 + $0x130] ss:$8 sps:$4 sm:$0xff]   ;;  %v855_v17 = vld [vmem:[%s1230_s1 + $0x144] ss:$8 sps:$4 sm:$0xff]  }
   0x7   :  { %432 = vmatpush1.bf16.msra.mxu0 %v839_v6  ;;  %v857_v18 = vld [vmem:[%s1230_s1 + $0x40] ss:$8 sps:$4 sm:$0xff]   ;;  %v859_v20 = vld [vmem:[%s1230_s1 + $0x54] ss:$8 sps:$4 sm:$0xff]   ;;  %v863_v22 = vld [vmem:[%s1230_s1 + $0x50] ss:$8 sps:$4 sm:$0xff]  }
   0x8   :  { %473 = vmatpush1.bf16.msra.mxu1 %v840_v7  ;;  %433 = vmatprep.subr.bf16.mxu0 %v841_v8  ;;  %v858_v19 = vld [vmem:[%s1230_s1 + $0x140] ss:$8 sps:$4 sm:$0xff]   ;;  %v861_v21 = vld [vmem:[%s1230_s1 + $0x154] ss:$8 sps:$4 sm:$0xff]   ;;  %v864_v23 = vld [vmem:[%s1230_s1 + $0x150] ss:$8 sps:$4 sm:$0xff]  }
   0x9   :  { %474 = vmatprep.subr.bf16.mxu1 %v843_v9  ;;  %v865_v24 = vld [vmem:[%s1230_s1 + $0x64] ss:$8 sps:$4 sm:$0xff]   ;;  %v869_v26 = vld [vmem:[%s1230_s1 + $0x60] ss:$8 sps:$4 sm:$0xff]   ;;  %v871_v28 = vld [vmem:[%s1230_s1 + $0x74] ss:$8 sps:$4 sm:$0xff]  }
   0xa   :  { %v867_v25 = vld [vmem:[%s1230_s1 + $0x164] ss:$8 sps:$4 sm:$0xff]   ;;  %v870_v27 = vld [vmem:[%s1230_s1 + $0x160] ss:$8 sps:$4 sm:$0xff]   ;;  %v873_v29 = vld [vmem:[%s1230_s1 + $0x174] ss:$8 sps:$4 sm:$0xff]  }
   0xb   :  { %434 = vmatpush1.bf16.msra.mxu0 %v845_v10  ;;  %v875_v30 = vld [vmem:[%s1230_s1 + $0x70] ss:$8 sps:$4 sm:$0xff]   ;;  %v877_v32 = vld [vmem:[%s1230_s1 + $0x84] ss:$8 sps:$4 sm:$0xff]   ;;  %v881_v34 = vld [vmem:[%s1230_s1 + $0x80] ss:$8 sps:$4 sm:$0xff]  }
   0xc   :  { %475 = vmatpush1.bf16.msra.mxu1 %v846_v11  ;;  %435 = vmatprep.subr.bf16.mxu0 %v847_v12  ;;  %v876_v31 = vld [vmem:[%s1230_s1 + $0x170] ss:$8 sps:$4 sm:$0xff]   ;;  %v879_v33 = vld [vmem:[%s1230_s1 + $0x184] ss:$8 sps:$4 sm:$0xff]   ;;  %v882_v35 = vld [vmem:[%s1230_s1 + $0x180] ss:$8 sps:$4 sm:$0xff]  }
   0xd   :  { %476 = vmatprep.subr.bf16.mxu1 %v849_v13  ;;  %v883_v36 = vld [vmem:[%s1230_s1 + $0x94] ss:$8 sps:$4 sm:$0xff]   ;;  %v887_v38 = vld [vmem:[%s1230_s1 + $0x90] ss:$8 sps:$4 sm:$0xff]   ;;  %v889_v40 = vld [vmem:[%s1230_s1 + $0xa4] ss:$8 sps:$4 sm:$0xff]  }
   0xe   :  { %v885_v37 = vld [vmem:[%s1230_s1 + $0x194] ss:$8 sps:$4 sm:$0xff]   ;;  %v888_v39 = vld [vmem:[%s1230_s1 + $0x190] ss:$8 sps:$4 sm:$0xff]   ;;  %v891_v41 = vld [vmem:[%s1230_s1 + $0x1a4] ss:$8 sps:$4 sm:$0xff]  }
   0xf   :  { %436 = vmatpush1.bf16.msra.mxu0 %v851_v14  ;;  %v893_v42 = vld [vmem:[%s1230_s1 + $0xa0] ss:$8 sps:$4 sm:$0xff]   ;;  %v895_v44 = vld [vmem:[%s1230_s1 + $0xb4] ss:$8 sps:$4 sm:$0xff]   ;;  %v899_v46 = vld [vmem:[%s1230_s1 + $0xb0] ss:$8 sps:$4 sm:$0xff]  }
  0x10   :  { %477 = vmatpush1.bf16.msra.mxu1 %v852_v15  ;;  %437 = vmatprep.subr.bf16.mxu0 %v853_v16  ;;  %v894_v43 = vld [vmem:[%s1230_s1 + $0x1a0] ss:$8 sps:$4 sm:$0xff]   ;;  %v897_v45 = vld [vmem:[%s1230_s1 + $0x1b4] ss:$8 sps:$4 sm:$0xff]   ;;  %v900_v47 = vld [vmem:[%s1230_s1 + $0x1b0] ss:$8 sps:$4 sm:$0xff]  }
  0x11   :  { %478 = vmatprep.subr.bf16.mxu1 %v855_v17  ;;  %v29_v48 = vld [vmem:[%s1231_s0] sm:$0xff]  ;;  %v30_v50 = vld [vmem:[%s1231_s0 + $0x8] sm:$0xff]  ;;  %v907_v56 = vld [vmem:[%s1230_s1 + $0xd4] ss:$8 sps:$4 sm:$0xff]  }
  0x12   :  { %v723_v49 = vcombine.high %v29_v48, %v29_v48  ;;  %v901_v51 = vld [vmem:[%s1230_s1 + $0xc4] ss:$8 sps:$4 sm:$0xff]   ;;  %v725_v52 = vcombine.high %v30_v50, %v30_v50  ;;  %v905_v54 = vld [vmem:[%s1230_s1 + $0xc0] ss:$8 sps:$4 sm:$0xff]   ;;  %v909_v57 = vld [vmem:[%s1230_s1 + $0x1d4] ss:$8 sps:$4 sm:$0xff]   ;;  %v722_v5 = vcombine.low %v29_v48, %v29_v48  ;;  %v724_v6 = vcombine.low %v30_v50, %v30_v50 }
  0x13   :  { %438 = vmatpush1.bf16.msra.mxu0 %v857_v18  ;;  %v903_v53 = vld [vmem:[%s1230_s1 + $0x1c4] ss:$8 sps:$4 sm:$0xff]   ;;  %v906_v55 = vld [vmem:[%s1230_s1 + $0x1c0] ss:$8 sps:$4 sm:$0xff]   ;;  %v911_v58 = vld [vmem:[%s1230_s1 + $0xd0] ss:$8 sps:$4 sm:$0xff]  }
  0x14   :  { %479 = vmatpush1.bf16.msra.mxu1 %v858_v19  ;;  %439 = vmatprep.subr.bf16.mxu0 %v859_v20  ;;  %v912_v59 = vld [vmem:[%s1230_s1 + $0x1d0] ss:$8 sps:$4 sm:$0xff]   ;;  %v913_v60 = vld [vmem:[%s1230_s1 + $0xe4] ss:$8 sps:$4 sm:$0xff]   ;;  %v917_v62 = vld [vmem:[%s1230_s1 + $0xe0] ss:$8 sps:$4 sm:$0xff]  }
  0x15   :  { %480 = vmatprep.subr.bf16.mxu1 %v861_v21  ;;  %461 = vmatprep.mubr.bf16.mxu0 %v723_v49  ;;  %v915_v61 = vld [vmem:[%s1230_s1 + $0x1e4] ss:$8 sps:$4 sm:$0xff]   ;;  %v918_v63 = vld [vmem:[%s1230_s1 + $0x1e0] ss:$8 sps:$4 sm:$0xff]   ;;  %v919_v0 = vld [vmem:[%s1230_s1 + $0xf4] ss:$8 sps:$4 sm:$0xff]  }
  0x16   :  { %502 = vmatprep.mubr.bf16.mxu1 %v725_v52  ;;  %v921_v1 = vld [vmem:[%s1230_s1 + $0x1f4] ss:$8 sps:$4 sm:$0xff]   ;;  %v923_v2 = vld [vmem:[%s1230_s1 + $0xf0] ss:$8 sps:$4 sm:$0xff]   ;;  %v929_v4 = vld [vmem:[%s1232_s3 + $0x40] sm:$0xff]  }
  0x17   :  { %440 = vmatpush1.bf16.msra.mxu0 %v863_v22  ;;  %v924_v3 = vld [vmem:[%s1230_s1 + $0x1f0] ss:$8 sps:$4 sm:$0xff]   ;;  %v930_v7 = vld [vmem:[%s1232_s3] sm:$0xff]   ;;  %v931_v8 = vld [vmem:[%s1232_s3 + $0x48] sm:$0xff]   ;;  %v522_v22 = vlaneseq }
  0x18   :  { %481 = vmatpush1.bf16.msra.mxu1 %v864_v23  ;;  %441 = vmatprep.subr.bf16.mxu0 %v865_v24  ;;  %v932_v9 = vld [vmem:[%s1232_s3 + $0x8] sm:$0xff]   ;;  %v933_v10 = vld [vmem:[%s1232_s3 + $0x50] sm:$0xff]   ;;  %v935_v12 = vld [vmem:[%s1232_s3 + $0x58] sm:$0xff]  }
  0x19   :  { %482 = vmatprep.subr.bf16.mxu1 %v867_v25  ;;  %v934_v11 = vld [vmem:[%s1232_s3 + $0x10] sm:$0xff]   ;;  %v936_v13 = vld [vmem:[%s1232_s3 + $0x18] sm:$0xff]   ;;  %v937_v14 = vld [vmem:[%s1232_s3 + $0x60] sm:$0xff]   ;;  %v523_v23 = vshrl.u32 %v522_v22, 7 }
  0x1a   :  { %v938_v15 = vld [vmem:[%s1232_s3 + $0x20] sm:$0xff]   ;;  %v939_v16 = vld [vmem:[%s1232_s3 + $0x68] sm:$0xff]   ;;  %v941_v18 = vld [vmem:[%s1232_s3 + $0x70] sm:$0xff]  }
  0x1b   :  { %442 = vmatpush1.bf16.msra.mxu0 %v869_v26  ;;  %v940_v17 = vld [vmem:[%s1232_s3 + $0x28] sm:$0xff]   ;;  %v942_v19 = vld [vmem:[%s1232_s3 + $0x30] sm:$0xff]   ;;  %v943_v20 = vld [vmem:[%s1232_s3 + $0x78] sm:$0xff]   ;;  %v524_v24 = vsub.s32 0, %v523_v23  ;;  %v528_v26 = vsub.s32 1, %v523_v23 }
  0x1c   :  { %483 = vmatpush1.bf16.msra.mxu1 %v870_v27  ;;  %443 = vmatprep.subr.bf16.mxu0 %v871_v28  ;;  %v944_v21 = vld [vmem:[%s1232_s3 + $0x38] sm:$0xff]   ;;  %v520_v25 = vld [vmem:[%s1233_s2] sm:$0x3] }
  0x1d   :  { %484 = vmatprep.subr.bf16.mxu1 %v873_v29  ;;  %v525_v27 = vrot.slane %v520_v25, %v524_v24  ;;  %v790_v48 = vld [vmem:[%s1234_s4] ss:$0 sm:$0xff] }
  0x1f   :  { %444 = vmatpush1.bf16.msra.mxu0 %v875_v30  ;;  %v529_v30 = vrot.slane %v520_v25, %v528_v26 }
  0x20   :  { %485 = vmatpush1.bf16.msra.mxu1 %v876_v31  ;;  %445 = vmatprep.subr.bf16.mxu0 %v877_v32 }
  0x21   :  { %486 = vmatprep.subr.bf16.mxu1 %v879_v33 }
  0x23   :  { %446 = vmatpush1.bf16.msra.mxu0 %v881_v34 }
  0x24   :  { %487 = vmatpush1.bf16.msra.mxu1 %v882_v35  ;;  %447 = vmatprep.subr.bf16.mxu0 %v883_v36 }
  0x25   :  { %488 = vmatprep.subr.bf16.mxu1 %v885_v37 }
  0x27   :  { %448 = vmatpush1.bf16.msra.mxu0 %v887_v38 }
  0x28   :  { %489 = vmatpush1.bf16.msra.mxu1 %v888_v39  ;;  %449 = vmatprep.subr.bf16.mxu0 %v889_v40 }
  0x29   :  { %490 = vmatprep.subr.bf16.mxu1 %v891_v41 }
  0x2b   :  { %450 = vmatpush1.bf16.msra.mxu0 %v893_v42 }
  0x2c   :  { %491 = vmatpush1.bf16.msra.mxu1 %v894_v43  ;;  %451 = vmatprep.subr.bf16.mxu0 %v895_v44 }
  0x2d   :  { %492 = vmatprep.subr.bf16.mxu1 %v897_v45 }
  0x2f   :  { %452 = vmatpush1.bf16.msra.mxu0 %v899_v46 }
  0x30   :  { %493 = vmatpush1.bf16.msra.mxu1 %v900_v47  ;;  %453 = vmatprep.subr.bf16.mxu0 %v901_v51 }
  0x31   :  { %494 = vmatprep.subr.bf16.mxu1 %v903_v53 }
  0x33   :  { %454 = vmatpush1.bf16.msra.mxu0 %v905_v54 }
  0x34   :  { %495 = vmatpush1.bf16.msra.mxu1 %v906_v55  ;;  %455 = vmatprep.subr.bf16.mxu0 %v907_v56 }
  0x35   :  { %496 = vmatprep.subr.bf16.mxu1 %v909_v57 }
  0x37   :  { %456 = vmatpush1.bf16.msra.mxu0 %v911_v58 }
  0x38   :  { %497 = vmatpush1.bf16.msra.mxu1 %v912_v59  ;;  %457 = vmatprep.subr.bf16.mxu0 %v913_v60 }
  0x39   :  { %498 = vmatprep.subr.bf16.mxu1 %v915_v61 }
  0x3b   :  { %458 = vmatpush1.bf16.msra.mxu0 %v917_v62 }
  0x3c   :  { %499 = vmatpush1.bf16.msra.mxu1 %v918_v63  ;;  %459 = vmatprep.subr.bf16.mxu0 %v919_v0 }
  0x3d   :  { %500 = vmatprep.subr.bf16.mxu1 %v921_v1 }
  0x3f   :  { %460 = vmatpush1.bf16.msra.mxu0 %v923_v2 }
  0x40   :  { %501 = vmatpush1.bf16.msra.mxu1 %v924_v3  ;;  %807 = vmatprep.subr.bf16.mxu0 %v929_v4 }
  0x42   :  { %462 = vmatmul.mubr.bf16.vlgmr.msra.gmra.mrb[0].mxu0 %v722_v5 }
  0x43   :  { %503 = vmatmul.mubr.bf16.vlgmr.msra.gmra.mrb[0].mxu1 %v724_v6  ;;  %808 = vmatpush3.bf16.msra.mxu0 %v930_v7 }
  0x44   :  { %809 = vmatprep.subr.bf16.mxu0 %v931_v8 }
  0x47   :  { %810 = vmatpush3.bf16.msra.mxu0 %v932_v9 }
  0x48   :  { %811 = vmatprep.subr.bf16.mxu0 %v933_v10 }
  0x4b   :  { %812 = vmatpush3.bf16.msra.mxu0 %v934_v11 }
  0x4c   :  { %813 = vmatprep.subr.bf16.mxu0 %v935_v12 }
  0x4f   :  { %814 = vmatpush3.bf16.msra.mxu0 %v936_v13 }
  0x50   :  { %815 = vmatprep.subr.bf16.mxu0 %v937_v14 }
  0x53   :  { %816 = vmatpush3.bf16.msra.mxu0 %v938_v15 }
  0x54   :  { %817 = vmatprep.subr.bf16.mxu0 %v939_v16 }
  0x57   :  { %818 = vmatpush3.bf16.msra.mxu0 %v940_v17 }
  0x58   :  { %819 = vmatprep.subr.bf16.mxu0 %v941_v18 }
  0x5b   :  { %820 = vmatpush3.bf16.msra.mxu0 %v942_v19 }
  0x5c   :  { %821 = vmatprep.subr.bf16.mxu0 %v943_v20 }
  0x5f   :  { %822 = vmatpush3.bf16.msra.mxu0 %v944_v21 }
 0x115   :  { %v463_v28 = vpop.f32.mrb[0].mxu0 }
 0x116   :  { %v504_v29 = vpop.f32.mrb[0].mxu1  ;;  %v465_v32 = vpop.f32.mrb[1].mxu0 }
 0x117   :  { %v505_v31 = vadd.f32 %v504_v29, %v463_v28  ;;  %v506_v33 = vpop.f32.mrb[1].mxu1  ;;  %v467_v35 = vpop.f32.mrb[2].mxu0 }
 0x118   :  { %v507_v34 = vadd.f32 %v506_v33, %v465_v32  ;;  %v508_v36 = vpop.f32.mrb[2].mxu1  ;;  %v468_v38 = vpop.f32.mrb[3].mxu0 }
 0x119   :  { %v532_v37 = vadd.f32 %v525_v27, %v505_v31  ;;  %v509_v39 = vpop.f32.mrb[3].mxu1 }
 0x11a   :  { %v533_v40 = vadd.f32 %v529_v30, %v507_v34 }
 0x11b   :  { %vm534_vm0 = vcmp.ge.f32.partialorder %v532_v37, 0.0  ;;  %v536_v41 = vmul.f32 0.2, %v532_v37 }
 0x11c   :  { %v537_v42 = vmul.f32 0.2, %v533_v40  ;;  %vm535_vm1 = vcmp.ge.f32.partialorder %v533_v40, 0.0 }
 0x11d   :  { %v538_v43 = vsel %vm534_vm0, %v532_v37, %v536_v41 }
 0x11e   :  { %v539_v44 = vsel %vm535_vm1, %v533_v40, %v537_v42  ;;  %v540_v46 = vpack.c.bf16 %v538_v43, %v538_v43 }
 0x11f   :  { %v541_v45 = vpack.c.bf16 %v539_v44, %v539_v44 }
 0x121   :  { %709 = vmatprep.mubr.bf16.mxu0 %v541_v45 }
 0x122   :  { %710 = vmatmul.mubr.bf16.vlgmr.msra.gmra.mrb[4].mxu0 %v540_v46 }
 0x1f5   :  { %v823_v47 = vpop.f32.mrb[4].mxu0 }
 0x1f6   :  { %v824_v49 = vpop.f32.mrb[5].mxu0 }
 0x1f7   :  { %v825_v50 = vadd.f32 %v824_v49, %v823_v47  ;;  %v826_v51 = vpop.f32.mrb[6].mxu0 }
 0x1f8   :  { %v827_v52 = vpop.f32.mrb[7].mxu0 }
 0x1f9   :  { %v712_v53 = vadd.f32 %v825_v50, %v790_v48 }
 0x1fb   :  { %717 = vst [vmem:[%s1235_s5] sm:$0xff] %v712_v53 }

</bundles_post_ra>
